<compile_context>
chip_gen: v7x
topology: tpu7x:2x2x1
jax: 0.10.0
libtpu: 0.0.40
codegen_flags: <defaults>
</compile_context>

<pallas_src>
import jax
import jax.numpy as jnp
from jax.experimental import pallas as pl
from jax.experimental.pallas import tpu as pltpu


def _round_up(x, m):
    return (x + m - 1) // m * m


def qnet_mlp_kernel(x_ref, w1_ref, b1_ref, w2_ref, b2_ref, out_ref):
    # Hoisted bias reads (once per grid step).
    b1 = b1_ref[...]                      # (1, hidden)        f32
    b2 = b2_ref[...]                      # (1, out_features)  f32

    # In-kernel cast of x to the weight dtype (no-op for the f32 path; VPU cast
    # for bf16 — hidden under the x/out DMAs).
    x = x_ref[...].astype(w1_ref.dtype)

    # Hidden layer: MXU matmul, f32 accumulate, f32 bias + ReLU on the VPU.
    h = jnp.dot(x, w1_ref[...], preferred_element_type=jnp.float32)
    h = jnp.maximum(h + b1, 0.0)

    # Output layer: narrow activation to the second weight's dtype, f32 accumulate.
    h = h.astype(w2_ref.dtype)
    y = jnp.dot(h, w2_ref[...], preferred_element_type=jnp.float32)

    out_ref[...] = (y + b2).astype(out_ref.dtype)


def linear_qnet_forward(x, w1, b1, w2, b2, *, block_batch=4096, use_bf16=False,
                        out_dtype=jnp.float32):
    """Fused forward pass of Linear_QNet.

    x  : (batch, in_features)        f32
    w1 : (in_features, hidden)       f32   (PyTorch weight, transposed)
    b1 : (1, hidden)                 f32
    w2 : (hidden, out_features)      f32   (PyTorch weight, transposed)
    b2 : (1, out_features)           f32
    Returns (batch, out_features) in `out_dtype`.
    """
    batch, in_features = x.shape
    hidden = w1.shape[1]
    out_features = w2.shape[1]

    # Tiny one-time weight casts (negligible); x stays f32 and is cast in-kernel.
    if use_bf16:
        w1 = w1.astype(jnp.bfloat16)
        w2 = w2.astype(jnp.bfloat16)
    b1 = b1.astype(jnp.float32)
    b2 = b2.astype(jnp.float32)

    # ---- Batch tile selection (no batch padding of x). ----
    # * multiple of 8 sublanes (or the full batch extent when batch <= 8),
    # * capped at block_batch,
    # * capped at ~batch/2 so the grid keeps >=2 steps (v7x 2-TC sharding).
    if batch <= 8:
        tb = batch                               # single full-extent block
    else:
        tb = min(block_batch, _round_up(pl.cdiv(batch, 2), 8))
        tb = max(tb, 8)
    grid = (pl.cdiv(batch, tb),)

    out = pl.pallas_call(
        qnet_mlp_kernel,
        out_shape=jax.ShapeDtypeStruct((batch, out_features), out_dtype),
        grid=grid,
        in_specs=[
            # x: tiled over the batch axis (last partial block allowed).
            pl.BlockSpec((tb, in_features), lambda i: (i, 0)),
            # Weights / biases: constant index_map -> VMEM-resident across steps.
            pl.BlockSpec((in_features, hidden), lambda i: (0, 0)),
            pl.BlockSpec((1, hidden), lambda i: (0, 0)),
            pl.BlockSpec((hidden, out_features), lambda i: (0, 0)),
            pl.BlockSpec((1, out_features), lambda i: (0, 0)),
        ],
        # Lane dim = full array extent (4): no output padding, masked OOB rows
        # on the final partial block are simply never written back.
        out_specs=pl.BlockSpec((tb, out_features), lambda i: (i, 0)),
        compiler_params=pltpu.CompilerParams(
            dimension_semantics=("parallel",),
            vmem_limit_bytes=32 * 1024 * 1024,
        ),
    )(x, w1, b1, w2, b2)

    return out


def init_params(key, input_size, hidden_size, output_size):
    """Deterministic init mimicking nn.Linear's U(-1/sqrt(fan_in), +1/sqrt(fan_in))."""
    k1, k2, k3, k4 = jax.random.split(key, 4)
    bound1 = 1.0 / jnp.sqrt(jnp.float32(input_size))
    bound2 = 1.0 / jnp.sqrt(jnp.float32(hidden_size))
    # Stored as (in, out) — i.e. PyTorch weight transposed.
    w1 = jax.random.uniform(k1, (input_size, hidden_size), jnp.float32, -bound1, bound1)
    b1 = jax.random.uniform(k2, (1, hidden_size), jnp.float32, -bound1, bound1)
    w2 = jax.random.uniform(k3, (hidden_size, output_size), jnp.float32, -bound2, bound2)
    b2 = jax.random.uniform(k4, (1, output_size), jnp.float32, -bound2, bound2)
    return w1, b1, w2, b2


# TODO(synk): Linear_QNet.save() (torch.save of the state_dict) is host-side
# checkpoint I/O with no Pallas equivalent; not implemented.

if __name__ == "__main__":
    input_size, hidden_size, output_size = 16, 32, 4

    key = jax.random.PRNGKey(0)
    kx, kp, kb = jax.random.split(key, 3)
    w1, b1, w2, b2 = init_params(kp, input_size, hidden_size, output_size)

    def ref_fwd(x):
        return jnp.maximum(x @ w1 + b1, 0.0) @ w2 + b2

    # --- 1) Small-shape check (batch=2), f32 path, single full-extent block. ---
    x_small = jax.random.normal(kx, (2, input_size), jnp.float32)
    out_small = jax.block_until_ready(linear_qnet_forward(x_small, w1, b1, w2, b2))
    assert out_small.shape == (2, output_size)
    assert jnp.allclose(out_small, ref_fwd(x_small), atol=1e-5, rtol=1e-5)

    # --- 2) Non-divisible batch (250): multi-step grid + masked partial block, f32. ---
    x_mid = jax.random.normal(kb, (250, input_size), jnp.float32)
    out_mid = jax.block_until_ready(linear_qnet_forward(x_mid, w1, b1, w2, b2))
    assert out_mid.shape == (250, output_size)
    assert jnp.allclose(out_mid, ref_fwd(x_mid), atol=1e-5, rtol=1e-5)

    # --- 3) Same batch, bf16 MXU path with in-kernel cast of x (looser tol). ---
    out_bf16 = jax.block_until_ready(
        linear_qnet_forward(x_mid, w1, b1, w2, b2, use_bf16=True))
    assert out_bf16.shape == (250, output_size)
    assert jnp.allclose(out_bf16, ref_fwd(x_mid), atol=5e-2, rtol=5e-2)

    print("KERNEL_OK")
</pallas_src>

<mosaic_0001>
module attributes {stable_mosaic.version = 11 : i64} {
  func.func @qnet_mlp_kernel(%arg0: i32, %arg1: memref<2x16xf32, #tpu.memory_space<vmem>>, %arg2: memref<16x32xf32, #tpu.memory_space<vmem>>, %arg3: memref<1x32xf32, #tpu.memory_space<vmem>>, %arg4: memref<32x4xf32, #tpu.memory_space<vmem>>, %arg5: memref<1x4xf32, #tpu.memory_space<vmem>>, %arg6: memref<2x4xf32, #tpu.memory_space<vmem>>) attributes {dimension_semantics = [#tpu.dimension_semantics<parallel>], iteration_bounds = array<i64: 1>, scalar_prefetch = 0 : i64, scratch_operands = 0 : i64, tpu.core_type = #tpu.core_type<tc>, window_params = [{transform_indices = @transform_0, window_bounds = array<i64: 2, 16>}, {pipeline_mode = #tpu.pipeline_mode<synchronous>, transform_indices = @transform_1, window_bounds = array<i64: 16, 32>}, {pipeline_mode = #tpu.pipeline_mode<synchronous>, transform_indices = @transform_2, window_bounds = array<i64: 1, 32>}, {pipeline_mode = #tpu.pipeline_mode<synchronous>, transform_indices = @transform_3, window_bounds = array<i64: 32, 4>}, {pipeline_mode = #tpu.pipeline_mode<synchronous>, transform_indices = @transform_4, window_bounds = array<i64: 1, 4>}, {transform_indices = @transform_5, window_bounds = array<i64: 2, 4>}]} {
    %c0 = arith.constant 0 : index
    %c0_0 = arith.constant 0 : index
    %0 = vector.load %arg3[%c0, %c0_0] : memref<1x32xf32, #tpu.memory_space<vmem>>, vector<1x32xf32>
    %c0_1 = arith.constant 0 : index
    %c0_2 = arith.constant 0 : index
    %1 = vector.load %arg5[%c0_1, %c0_2] : memref<1x4xf32, #tpu.memory_space<vmem>>, vector<1x4xf32>
    %c0_3 = arith.constant 0 : index
    %c0_4 = arith.constant 0 : index
    %2 = vector.load %arg1[%c0_3, %c0_4] : memref<2x16xf32, #tpu.memory_space<vmem>>, vector<2x16xf32>
    %c0_5 = arith.constant 0 : index
    %c0_6 = arith.constant 0 : index
    %3 = vector.load %arg2[%c0_5, %c0_6] : memref<16x32xf32, #tpu.memory_space<vmem>>, vector<16x32xf32>
    %cst = arith.constant dense<0.000000e+00> : vector<2x32xf32>
    %4 = tpu.matmul %2, %3, %cst {dimension_numbers = #tpu.dot_dimension_numbers<[1], [0], [0], [1], [0, 0, 1, 1], [], []>} : vector<2x16xf32>, vector<16x32xf32>, vector<2x32xf32> -> vector<2x32xf32>
    %5 = vector.broadcast %0 : vector<1x32xf32> to vector<2x32xf32>
    %6 = arith.addf %4, %5 : vector<2x32xf32>
    %cst_7 = arith.constant 0.000000e+00 : f32
    %7 = vector.broadcast %cst_7 : f32 to vector<2x32xf32>
    %8 = arith.maximumf %6, %7 : vector<2x32xf32>
    %c0_8 = arith.constant 0 : index
    %c0_9 = arith.constant 0 : index
    %9 = vector.load %arg4[%c0_8, %c0_9] : memref<32x4xf32, #tpu.memory_space<vmem>>, vector<32x4xf32>
    %cst_10 = arith.constant dense<0.000000e+00> : vector<2x4xf32>
    %10 = tpu.matmul %8, %9, %cst_10 {dimension_numbers = #tpu.dot_dimension_numbers<[1], [0], [0], [1], [0, 0, 1, 1], [], []>} : vector<2x32xf32>, vector<32x4xf32>, vector<2x4xf32> -> vector<2x4xf32>
    %11 = vector.broadcast %1 : vector<1x4xf32> to vector<2x4xf32>
    %12 = arith.addf %10, %11 : vector<2x4xf32>
    %c0_11 = arith.constant 0 : index
    %c0_12 = arith.constant 0 : index
    %13 = vector.load %arg6[%c0_11, %c0_12] : memref<2x4xf32, #tpu.memory_space<vmem>>, vector<2x4xf32>
    tpu.vector_store %arg6[%c0_11, %c0_12], %12 {strides = array<i32>} : memref<2x4xf32, #tpu.memory_space<vmem>>, vector<2x4xf32>,
    return
  }
  func.func @transform_0(%arg0: i32) -> (i32, i32) {
    %c0_i32 = arith.constant 0 : i32
    %c0_i32_0 = arith.constant 0 : i32
    return %arg0, %c0_i32 : i32, i32
  }
  func.func @transform_1(%arg0: i32) -> (i32, i32) {
    %c0_i32 = arith.constant 0 : i32
    %c0_i32_0 = arith.constant 0 : i32
    %c0_i32_1 = arith.constant 0 : i32
    return %c0_i32, %c0_i32_0 : i32, i32
  }
  func.func @transform_2(%arg0: i32) -> (i32, i32) {
    %c0_i32 = arith.constant 0 : i32
    %c0_i32_0 = arith.constant 0 : i32
    %c0_i32_1 = arith.constant 0 : i32
    return %c0_i32, %c0_i32_0 : i32, i32
  }
  func.func @transform_3(%arg0: i32) -> (i32, i32) {
    %c0_i32 = arith.constant 0 : i32
    %c0_i32_0 = arith.constant 0 : i32
    %c0_i32_1 = arith.constant 0 : i32
    return %c0_i32, %c0_i32_0 : i32, i32
  }
  func.func @transform_4(%arg0: i32) -> (i32, i32) {
    %c0_i32 = arith.constant 0 : i32
    %c0_i32_0 = arith.constant 0 : i32
    %c0_i32_1 = arith.constant 0 : i32
    return %c0_i32, %c0_i32_0 : i32, i32
  }
  func.func @transform_5(%arg0: i32) -> (i32, i32) {
    %c0_i32 = arith.constant 0 : i32
    %c0_i32_0 = arith.constant 0 : i32
    return %arg0, %c0_i32 : i32, i32
  }
}

</mosaic_0001>

<bundles_post_ra>
// kernel: tpu_custom_call.1
= control target key start
LH: loop header
LB: loop body
LE: loop exit
PB: predicated region body
PF: predicated region fallthrough
CT: control target
= control target key end

     0   :  { %v274_v2 = vmov 0.0|0.0   ;;  %vm275_vm0 = vmmov 0   ;;  %v276_v4 = vmov 0.0   ;;  %s347_s0 = inlined_call_operand.vmem [shape: f32[2,16], index: 0, kind: input, shape index: {}]   ;;  %s348_s1 = inlined_call_operand.vmem [shape: f32[16,32], index: 1, kind: input, shape index: {}]   ;;  %s349_s2 = inlined_call_operand.vmem [shape: f32[1,32], index: 2, kind: input, shape index: {}]   ;;  %s350_s3 = inlined_call_operand.vmem [shape: f32[32,4], index: 3, kind: input, shape index: {}]   ;;  %s351_s4 = inlined_call_operand.vmem [shape: f32[1,4], index: 4, kind: input, shape index: {}]   ;;  %s352_s5 = inlined_call_operand.hbm [shape: f32[2,4], index: 5, kind: output, shape index: {}]  }
   0x1   :  { %v24_v0 = vld [vmem:[%s348_s1] sm:$0xff]  ;;  %v25_v1 = vld [vmem:[%s348_s1 + $0x8] sm:$0xff]  ;;  %237 = vmatprep.subr.bf16.mxu0 %v274_v2  ;;  %223 = vmatprep.mubr.msk.f32.mxu0 %vm275_vm0, %v276_v4 }
   0x2   :  { %v238_v3 = vpack.c.bf16 %v25_v1, %v24_v0  ;;  %v107_v5 = vld [vmem:[%s350_s3] sm:$0xff]  ;;  %v108_v6 = vld [vmem:[%s350_s3 + $0x8] sm:$0xff]  ;;  %240 = vmatprep.subr.bf16.mxu1 %v274_v2  ;;  %234 = vmatprep.mubr.msk.f32.mxu1 %vm275_vm0, %v276_v4 }
   0x3   :  { %v241_v7 = vpack.c.bf16 %v108_v6, %v107_v5 }
   0x4   :  { %10 = vsyncpa [#allocation3], 0  ;;  %239 = vmatpush3.bf16.msra.mxu0 %v238_v3  ;;  %v23_v8 = vld [vmem:[%s347_s0] sm:$0x3]  ;;  %vm32_vm1 = vcmask 130048   ;;  %v109_v9 = vld [vmem:[%s350_s3 + $0x10] sm:$0xff] }
   0x5   :  { %242 = vmatpush3.bf16.msra.mxu1 %v241_v7  ;;  %v110_v10 = vld [vmem:[%s350_s3 + $0x18] sm:$0xff]  ;;  %v207_v12 = vld [vmem:[%s349_s2] ss:$0 sm:$0xff]  ;;  %vm117_vm2 = vcmask 261120   ;;  %s277_s9 = smov [#allocation2]   ;;  %vm191_vm3 = vcmask 25600  }
   0x6   :  { %243 = vmatprep.subr.bf16.mxu1 %v274_v2  ;;  %v244_v11 = vpack.c.bf16 %v110_v10, %v109_v9  ;;  %v209_v17 = vld [vmem:[%s351_s4] ss:$0 sm:$0xff]  ;;  %s199_s10 = sshll.u32 %s277_s9, 4  ;;  %s200_s10 = int_to_ptr.vmem [resolvable:$true] %s199_s10 }
   0x7   :  { %224 = vmatmul.mubr.msk.f32.vlgmr.msra.gmra.mrb[0].mxu0 %vm32_vm1, %v23_v8  ;;  %s250_s3 = scalar_lea.vmem %s200_s10, 32  ;;  %p255_p1 = scmp.lt.s32.totalorder %s200_s10, %s200_s10 }
   0x8   :  { %p251_p0 = scmp.ne.s32.totalorder %s200_s10, %s250_s3  ;;  %p256_p2 = scmp.lt.s32.totalorder %s250_s3, %s250_s3 }
   0x9   :  { %245 = vmatpush3.bf16.msra.mxu1 %v244_v11 }
   0xa   :  { %p257_p3 = por %p256_p2, %p255_p1 }
   0xc   :  { %p258_p4 = pnand %p257_p3, %p251_p0 }
  0xda   :  { %v102_v13 = vpop.f32.mrb[0].mxu0 }
  0xdb   :  { %v103_v14 = vadd.f32 %v207_v12, %v102_v13  ;;  %v225_v15 = vpop.f32.mrb[1].mxu0 }
  0xdd   :  { %v106_v16 = vmax.f32 %v103_v14, 0.0 }
  0xdf   :  { %235 = vmatmul.mubr.msk.f32.vlgmr.msra.gmra.mrb[0].mxu1 %vm117_vm2, %v106_v16 }
 0x1b2   :  { %v187_v18 = vpop.f32.mrb[0].mxu1 }
 0x1b3   :  { %v188_v19 = vadd.f32 %v209_v17, %v187_v18  ;;  %v236_v20 = vpop.f32.mrb[1].mxu1 }
 0x1b5   :  { %192 = vst.msk [vmem:[#allocation2] sm:$0x3] %vm191_vm3, %v188_v19 }
 0x1b6   :  { %261 = shalt.err (!%p258_p4)
}
 0x1b7   :  { %s262_s12 = scalar_lea.hbm %s352_s5, 32 }
 0x1b8   :  { %p263_p5 = scmp.ne.s32.totalorder %s352_s5, %s262_s12  ;;  %p266_p6 = scmp.lt.u32.totalorder %s262_s12, %s352_s5 }
 0x1ba   :  { %p268_p7 = pnand %p266_p6, %p263_p5 }
 0x1bc   :  { %271 = shalt.err (!%p268_p7)
}
 0x1bd   :  { %202 = dma.vmem_to_hbm [thread:$0]  %s200_s10, 32, %s352_s5, [#allocation3]  }
 0x1be   :  { %272 = dma.done.wait [#allocation3], 32  }
 0x1bf   :  { %273 = vsyncadd [#allocation3], 4294967264 }
 0x1c0   :  { %206 = vsyncpa [#allocation3], 1 }

</bundles_post_ra>
